<compile_context>
chip_gen: v7x
topology: tpu7x:2x2x1
jax: 0.10.0
libtpu: 0.0.40
codegen_flags: <defaults>
</compile_context>

<pallas_src>
import math
from functools import partial

import numpy as np
import jax
import jax.numpy as jnp
from jax import lax
from jax.experimental import pallas as pl
from jax.experimental.pallas import tpu as pltpu


# ----------------------------------------------------------------------------------
# generation-aware limits / tiling helpers
# ----------------------------------------------------------------------------------
def _round_up(x, m):
    return ((x + m - 1) // m) * m


def _pick_tile(total, target, mult):
    """Largest divisor of `total` that is a multiple of `mult` and <= target.
    Falls back to `total` (full-dim blocks are always legal)."""
    cap = min(target, total)
    for cand in range(cap, 0, -1):
        if cand % mult == 0 and total % cand == 0:
            return cand
    return total


_VMEM_LIMIT = None


def _vmem_limit():
    global _VMEM_LIMIT
    if _VMEM_LIMIT is None:
        try:
            cap = int(pltpu.get_tpu_info().vmem_capacity_bytes)
        except Exception:
            cap = 0
        if cap >= (96 << 20):            # v5e / v6e / v5p: 128 MiB physical VMEM
            _VMEM_LIMIT = 100 << 20
        elif cap > 0:                    # v7x: 64 MiB physical per TensorCore
            _VMEM_LIMIT = max(min(56 << 20, cap - (8 << 20)), 16 << 20)
        else:                            # unknown -> conservative
            _VMEM_LIMIT = 56 << 20
    return _VMEM_LIMIT


# ----------------------------------------------------------------------------------
# single-buffering for constant-index weight blocks (probed once, safe fallback)
# ----------------------------------------------------------------------------------
_SINGLE_BUF = None


def _probe_single_buffer():
    def _k(x_ref, o_ref):
        o_ref[...] = x_ref[...] * 2.0

    try:
        f = pl.pallas_call(
            _k,
            out_shape=jax.ShapeDtypeStruct((8, 128), jnp.float32),
            grid=(2,),
            in_specs=[pl.BlockSpec((8, 128), lambda i: (0, 0),
                                   pipeline_mode=pl.Buffered(1))],
            out_specs=pl.BlockSpec((8, 128), lambda i: (0, 0)),
        )
        r = jax.block_until_ready(f(jnp.ones((8, 128), jnp.float32)))
        return bool(jnp.allclose(r, 2.0))
    except Exception:
        return False


def _const_spec(block_shape, index_map):
    """BlockSpec for weights whose block index never changes across the grid:
    single-buffered (saves the useless second VMEM buffer) when supported."""
    global _SINGLE_BUF
    if _SINGLE_BUF is None:
        _SINGLE_BUF = _probe_single_buffer()
    if _SINGLE_BUF:
        return pl.BlockSpec(block_shape, index_map, pipeline_mode=pl.Buffered(1))
    return pl.BlockSpec(block_shape, index_map)


# ----------------------------------------------------------------------------------
# sin/cos positional embedding (faithful numpy port of the reference code)
# ----------------------------------------------------------------------------------
def get_1d_sincos_pos_embed_from_grid(embed_dim, pos):
    assert embed_dim % 2 == 0
    omega = np.arange(embed_dim // 2, dtype=np.float64)
    omega /= embed_dim / 2.0
    omega = 1.0 / 10000 ** omega
    pos = pos.reshape(-1)
    out = np.einsum('m,d->md', pos, omega)
    return np.concatenate([np.sin(out), np.cos(out)], axis=1)


def get_2d_sincos_pos_embed_from_grid(embed_dim, grid):
    assert embed_dim % 2 == 0
    emb_h = get_1d_sincos_pos_embed_from_grid(embed_dim // 2, grid[0])
    emb_w = get_1d_sincos_pos_embed_from_grid(embed_dim // 2, grid[1])
    return np.concatenate([emb_h, emb_w], axis=1)


def get_2d_sincos_pos_embed(embed_dim, grid_size):
    grid_h = np.arange(grid_size, dtype=np.float32)
    grid_w = np.arange(grid_size, dtype=np.float32)
    grid = np.meshgrid(grid_w, grid_h)
    grid = np.stack(grid, axis=0)
    grid = grid.reshape([2, 1, grid_size, grid_size])
    return get_2d_sincos_pos_embed_from_grid(embed_dim, grid)


# ----------------------------------------------------------------------------------
# small elementwise helpers (shared by kernels and the pure-JAX reference)
# ----------------------------------------------------------------------------------
def _silu(x):
    return x * jax.nn.sigmoid(x)


def _gelu_tanh(x):
    return 0.5 * x * (1.0 + jnp.tanh(0.7978845608028654 * (x + 0.044715 * x * x * x)))


def _layernorm(x, eps=1e-6):
    mu = jnp.mean(x, axis=-1, keepdims=True)
    var = jnp.mean((x - mu) ** 2, axis=-1, keepdims=True)
    return (x - mu) * jax.lax.rsqrt(var + eps)


def _mm(a, b):
    # bf16 operands, f32 accumulate -- mirrors the in-kernel matmul policy exactly.
    return jnp.dot(a.astype(jnp.bfloat16), b.astype(jnp.bfloat16),
                   preferred_element_type=jnp.float32)


def timestep_embedding(t, dim, max_period=10000):
    half = dim // 2
    freqs = jnp.exp(-math.log(max_period) * jnp.arange(half, dtype=jnp.float32) / half)
    args = t[:, None].astype(jnp.float32) * freqs[None, :]
    return jnp.concatenate([jnp.cos(args), jnp.sin(args)], axis=-1)


# ----------------------------------------------------------------------------------
# Kernel 1: tiled linear  y = x @ W + b  (patch embed, fused adaLN projections)
# ----------------------------------------------------------------------------------
def _linear_kernel(x_ref, w_ref, b_ref, o_ref, acc_ref):
    @pl.when(pl.program_id(2) == 0)
    def _():
        acc_ref[...] = jnp.zeros_like(acc_ref)

    acc_ref[...] += jnp.dot(x_ref[...].astype(jnp.bfloat16),
                            w_ref[...].astype(jnp.bfloat16),
                            preferred_element_type=jnp.float32)

    @pl.when(pl.program_id(2) == pl.num_programs(2) - 1)
    def _():
        o_ref[...] = (acc_ref[...] + b_ref[...]).astype(o_ref.dtype)


def pallas_linear(x, w, b, *, tm=None, tn=None, tk=512):
    M, K = x.shape
    K2, Nout = w.shape
    assert K == K2
    big = _vmem_limit() > (80 << 20)
    if tm is None:
        tm = 512 if big else 256
    if tn is None:
        tn = 512 if big else 256

    Mp = _round_up(M, 8)
    tm = _pick_tile(Mp, tm, 8)
    Np = _round_up(Nout, 128)
    tn = _pick_tile(Np, tn, 128)
    if K <= tk:                     # small K (e.g. patch embed): full-K block, no pad
        Kp, tk = K, K
    else:
        Kp = _round_up(K, 128)
        tk = _pick_tile(Kp, tk, 128)

    xp = x if (Mp == M and Kp == K) else jnp.pad(x, ((0, Mp - M), (0, Kp - K)))
    wp = w if (Kp == K and Np == Nout) else jnp.pad(w, ((0, Kp - K), (0, Np - Nout)))
    bp = b if Np == Nout else jnp.pad(b, ((0, 0), (0, Np - Nout)))

    out = pl.pallas_call(
        _linear_kernel,
        out_shape=jax.ShapeDtypeStruct((Mp, Np), x.dtype),
        grid=(Mp // tm, Np // tn, Kp // tk),
        in_specs=[
            pl.BlockSpec((tm, tk), lambda i, j, k: (i, k)),
            pl.BlockSpec((tk, tn), lambda i, j, k: (k, j)),
            pl.BlockSpec((1, tn), lambda i, j, k: (0, j)),
        ],
        out_specs=pl.BlockSpec((tm, tn), lambda i, j, k: (i, j)),
        scratch_shapes=[pltpu.VMEM((tm, tn), jnp.float32)],
        compiler_params=pltpu.CompilerParams(
            dimension_semantics=("parallel", "parallel", "arbitrary"),
            vmem_limit_bytes=_vmem_limit()),
    )(xp, wp, bp)
    if Mp != M or Np != Nout:
        out = out[:M, :Nout]
    return out


# ----------------------------------------------------------------------------------
# Kernel 2: LN + adaLN-modulate + QKV projection (token tiled) -> q, k, v (bf16)
# ----------------------------------------------------------------------------------
def _qkv_kernel(x_ref, mod_ref, w_ref, b_ref, q_ref, k_ref, v_ref):
    D = x_ref.shape[2]
    x = x_ref[0]                                   # (tt, D) f32
    mod = mod_ref[...]                             # (1, 6D) f32
    h = _layernorm(x) * (1.0 + mod[:, D:2 * D]) + mod[:, 0:D]
    qkv = jnp.dot(h.astype(jnp.bfloat16), w_ref[...],
                  preferred_element_type=jnp.float32) + b_ref[...]
    q_ref[0] = qkv[:, 0:D].astype(q_ref.dtype)
    k_ref[0] = qkv[:, D:2 * D].astype(k_ref.dtype)
    v_ref[0] = qkv[:, 2 * D:3 * D].astype(v_ref.dtype)


def qkv_proj(x, mod, w_qkv, b_qkv):
    N, T, D = x.shape
    tt = _pick_tile(T, 256, 8)
    out_sd = jax.ShapeDtypeStruct((N, T, D), jnp.bfloat16)
    return pl.pallas_call(
        _qkv_kernel,
        out_shape=(out_sd, out_sd, out_sd),
        grid=(N, T // tt),
        in_specs=[
            pl.BlockSpec((1, tt, D), lambda n, t: (n, t, 0)),
            pl.BlockSpec((1, 6 * D), lambda n, t: (n, 0)),
            _const_spec((D, 3 * D), lambda n, t: (0, 0)),
            _const_spec((1, 3 * D), lambda n, t: (0, 0)),
        ],
        out_specs=[pl.BlockSpec((1, tt, D), lambda n, t: (n, t, 0))] * 3,
        compiler_params=pltpu.CompilerParams(
            dimension_semantics=("parallel", "parallel"),
            vmem_limit_bytes=_vmem_limit()),
    )(x, mod, w_qkv, b_qkv)


# ----------------------------------------------------------------------------------
# Kernel 3: attention core (query tiled, full K/V resident) + out-proj + residual
# ----------------------------------------------------------------------------------
def _attn_kernel(x_ref, mod_ref, q_ref, k_ref, v_ref, wp_ref, bp_ref, o_ref, *,
                 num_heads):
    D = x_ref.shape[2]
    hd = D // num_heads
    inv = 1.0 / math.sqrt(hd)

    mod = mod_ref[...]
    gate = mod[:, 2 * D:3 * D]                     # (1, D) f32

    q = q_ref[0]                                   # (tq, D) bf16
    k = k_ref[0]                                   # (T,  D) bf16
    v = v_ref[0]

    head_out = []
    for h in range(num_heads):                     # static unroll; 2-D MXU matmuls only
        sl = slice(h * hd, (h + 1) * hd)
        qh = q[:, sl] * inv                        # scale folded into q (bf16)
        kh = k[:, sl]
        vh = v[:, sl]
        s = lax.dot_general(qh, kh, (((1,), (1,)), ((), ())),
                            preferred_element_type=jnp.float32)      # (tq, T)
        s = s - jnp.max(s, axis=-1, keepdims=True)
        p = jnp.exp(s)
        p = p * pl.reciprocal(jnp.sum(p, axis=-1, keepdims=True), approx=True)
        head_out.append(jnp.dot(p.astype(jnp.bfloat16), vh,
                                preferred_element_type=jnp.float32))  # (tq, hd)
    av = jnp.concatenate(head_out, axis=-1)        # (tq, D) f32

    out = jnp.dot(av.astype(jnp.bfloat16), wp_ref[...],
                  preferred_element_type=jnp.float32) + bp_ref[...]
    o_ref[0] = (x_ref[0] + gate * out).astype(o_ref.dtype)


def attn_core(x, mod, q, k, v, w_proj, b_proj, num_heads):
    N, T, D = x.shape
    tq = _pick_tile(T, 128, 8)
    kernel = partial(_attn_kernel, num_heads=num_heads)
    return pl.pallas_call(
        kernel,
        out_shape=jax.ShapeDtypeStruct((N, T, D), x.dtype),
        grid=(N, T // tq),
        in_specs=[
            pl.BlockSpec((1, tq, D), lambda n, i: (n, i, 0)),   # x (residual)
            pl.BlockSpec((1, 6 * D), lambda n, i: (n, 0)),      # packed mods
            pl.BlockSpec((1, tq, D), lambda n, i: (n, i, 0)),   # q tile
            pl.BlockSpec((1, T, D), lambda n, i: (n, 0, 0)),    # k (full, resident)
            pl.BlockSpec((1, T, D), lambda n, i: (n, 0, 0)),    # v (full, resident)
            _const_spec((D, D), lambda n, i: (0, 0)),
            _const_spec((1, D), lambda n, i: (0, 0)),
        ],
        out_specs=pl.BlockSpec((1, tq, D), lambda n, i: (n, i, 0)),
        compiler_params=pltpu.CompilerParams(
            dimension_semantics=("parallel", "parallel"),
            vmem_limit_bytes=_vmem_limit()),
    )(x, mod, q, k, v, w_proj, b_proj)


# ----------------------------------------------------------------------------------
# Kernel 4: MLP half (token tiled, hidden dim Dh tiled with f32 accumulator)
# ----------------------------------------------------------------------------------
def _mlp_kernel(x_ref, mod_ref, w1_ref, b1_ref, w2_ref, b2_ref, o_ref, h_ref, acc_ref):
    D = x_ref.shape[2]
    dh = pl.program_id(2)

    @pl.when(dh == 0)
    def _():
        x = x_ref[0]
        mod = mod_ref[...]
        h = _layernorm(x) * (1.0 + mod[:, 4 * D:5 * D]) + mod[:, 3 * D:4 * D]
        h_ref[...] = h.astype(h_ref.dtype)         # cached modulated LN(x), bf16
        acc_ref[...] = jnp.zeros_like(acc_ref)

    h1 = jnp.dot(h_ref[...], w1_ref[...], preferred_element_type=jnp.float32) + b1_ref[...]
    acc_ref[...] += jnp.dot(_gelu_tanh(h1).astype(jnp.bfloat16), w2_ref[...],
                            preferred_element_type=jnp.float32)

    @pl.when(dh == pl.num_programs(2) - 1)
    def _():
        mod = mod_ref[...]
        gate = mod[:, 5 * D:6 * D]
        o_ref[0] = (x_ref[0] + gate * (acc_ref[...] + b2_ref[...])).astype(o_ref.dtype)


def mlp_block(x, mod, w_fc1, b_fc1, w_fc2, b_fc2):
    N, T, D = x.shape
    Dh = w_fc1.shape[1]
    tt = _pick_tile(T, 256, 8)
    big = _vmem_limit() > (80 << 20)
    tdh = _pick_tile(Dh, 1024 if big else 512, 128)
    return pl.pallas_call(
        _mlp_kernel,
        out_shape=jax.ShapeDtypeStruct((N, T, D), x.dtype),
        grid=(N, T // tt, Dh // tdh),
        in_specs=[
            pl.BlockSpec((1, tt, D), lambda n, t, h: (n, t, 0)),
            pl.BlockSpec((1, 6 * D), lambda n, t, h: (n, 0)),
            pl.BlockSpec((D, tdh), lambda n, t, h: (0, h)),
            pl.BlockSpec((1, tdh), lambda n, t, h: (0, h)),
            pl.BlockSpec((tdh, D), lambda n, t, h: (h, 0)),
            _const_spec((1, D), lambda n, t, h: (0, 0)),
        ],
        out_specs=pl.BlockSpec((1, tt, D), lambda n, t, h: (n, t, 0)),
        scratch_shapes=[
            pltpu.VMEM((tt, D), jnp.bfloat16),     # cached modulated LN(x)
            pltpu.VMEM((tt, D), jnp.float32),      # fc2 accumulator
        ],
        compiler_params=pltpu.CompilerParams(
            dimension_semantics=("parallel", "parallel", "arbitrary"),
            vmem_limit_bytes=_vmem_limit()),
    )(x, mod, w_fc1, b_fc1, w_fc2, b_fc2)


# ----------------------------------------------------------------------------------
# Kernel 5: FinalLayer (LN + modulate + linear), token tiled, lane-dense stores
# ----------------------------------------------------------------------------------
def _final_kernel(x_ref, mod_ref, w_ref, b_ref, o_ref):
    D = x_ref.shape[2]
    x = x_ref[0]
    mod = mod_ref[...]
    h = _layernorm(x) * (1.0 + mod[:, D:2 * D]) + mod[:, 0:D]
    out = jnp.dot(h.astype(jnp.bfloat16), w_ref[...],
                  preferred_element_type=jnp.float32) + b_ref[...]
    o_ref[0] = out.astype(o_ref.dtype)


def final_layer(x, mod_f, w_lin, b_lin):
    N, T, D = x.shape
    P = w_lin.shape[1]
    Pp = _round_up(P, 128)                         # zero-pad features -> dense vst
    wp = w_lin if Pp == P else jnp.pad(w_lin, ((0, 0), (0, Pp - P)))
    bp = b_lin if Pp == P else jnp.pad(b_lin, ((0, 0), (0, Pp - P)))
    tt = _pick_tile(T, 256, 8)
    out = pl.pallas_call(
        _final_kernel,
        out_shape=jax.ShapeDtypeStruct((N, T, Pp), x.dtype),
        grid=(N, T // tt),
        in_specs=[
            pl.BlockSpec((1, tt, D), lambda n, t: (n, t, 0)),
            pl.BlockSpec((1, 2 * D), lambda n, t: (n, 0)),
            _const_spec((D, Pp), lambda n, t: (0, 0)),
            _const_spec((1, Pp), lambda n, t: (0, 0)),
        ],
        out_specs=pl.BlockSpec((1, tt, Pp), lambda n, t: (n, t, 0)),
        compiler_params=pltpu.CompilerParams(
            dimension_semantics=("parallel", "parallel"),
            vmem_limit_bytes=_vmem_limit()),
    )(x, mod_f, wp, bp)
    return out[:, :, :P]


# ----------------------------------------------------------------------------------
# parameter initialization (deterministic, synthetic; big weights stored bf16)
# ----------------------------------------------------------------------------------
def init_params(key, cfg):
    D = cfg['hidden_size']
    C = cfg['in_channels']
    p = cfg['patch_size']
    depth = cfg['depth']
    mlp_hidden = int(D * cfg['mlp_ratio'])
    out_c = cfg['out_channels']
    freq = cfg['freq_size']
    nc = cfg['num_classes']
    grid_size = cfg['input_size'] // p
    bf16 = jnp.bfloat16

    def w(k, shape, s=0.05, dtype=jnp.float32):
        return (s * jax.random.normal(k, shape, dtype=jnp.float32)).astype(dtype)

    ks = jax.random.split(key, 10 + depth)
    params = {}
    params['patch_w'] = w(ks[0], (C * p * p, D), dtype=bf16)
    params['patch_b'] = w(ks[1], (1, D))
    params['pos_embed'] = jnp.asarray(
        get_2d_sincos_pos_embed(D, grid_size), dtype=jnp.float32)[None]   # (1, T, D)
    params['t_w1'] = w(ks[2], (freq, D))
    params['t_b1'] = w(ks[3], (1, D))
    params['t_w2'] = w(ks[4], (D, D))
    params['t_b2'] = w(ks[5], (1, D))
    params['y_table'] = w(ks[6], (nc + 1, D))      # +1 slot: cfg (dropout) embedding

    ada_w, ada_b, blocks = [], [], []
    for i in range(depth):
        bk = jax.random.split(ks[10 + i], 10)
        ada_w.append(w(bk[0], (D, 6 * D), 0.5))
        ada_b.append(w(bk[1], (1, 6 * D), 0.5))
        blocks.append(dict(
            w_qkv=w(bk[2], (D, 3 * D), dtype=bf16), b_qkv=w(bk[3], (1, 3 * D)),
            w_proj=w(bk[4], (D, D), dtype=bf16), b_proj=w(bk[5], (1, D)),
            w_fc1=w(bk[6], (D, mlp_hidden), dtype=bf16), b_fc1=w(bk[7], (1, mlp_hidden)),
            w_fc2=w(bk[8], (mlp_hidden, D), dtype=bf16), b_fc2=w(bk[9], (1, D)),
        ))
    params['blocks'] = blocks

    fk = jax.random.split(ks[7], 4)
    ada_w.append(w(fk[0], (D, 2 * D), 0.5))
    ada_b.append(w(fk[1], (1, 2 * D), 0.5))
    params['final'] = dict(
        w_lin=w(fk[2], (D, p * p * out_c), dtype=bf16),
        b_lin=w(fk[3], (1, p * p * out_c)),
    )
    # every block's adaLN projection + the final layer's, fused into one weight
    params['w_ada_all'] = jnp.concatenate(ada_w, axis=1).astype(bf16)     # (D, 6*depth*D + 2D)
    params['b_ada_all'] = jnp.concatenate(ada_b, axis=1)                  # f32
    return params


# ----------------------------------------------------------------------------------
# full DiT forward (Pallas kernels for hot paths, plain JAX glue)
# ----------------------------------------------------------------------------------
def dit_forward(params, x, t, y, cfg):
    N, C, H, W = x.shape
    p = cfg['patch_size']
    D = cfg['hidden_size']
    heads = cfg['num_heads']
    depth = cfg['depth']
    out_c = cfg['out_channels']
    hh, ww = H // p, W // p
    T = hh * ww

    # patchify (Conv2d(kernel=stride=p) + flatten + transpose of PatchEmbed)
    patches = x.reshape(N, C, hh, p, ww, p).transpose(0, 2, 4, 1, 3, 5).reshape(N * T, C * p * p)
    tok = pallas_linear(patches, params['patch_w'], params['patch_b']).reshape(N, T, D)
    tok = tok + params['pos_embed']

    # timestep embedder MLP: M = batch (tiny) -> plain JAX, not worth a pallas_call
    t_freq = timestep_embedding(t, cfg['freq_size'])
    t_emb = _silu(t_freq @ params['t_w1'] + params['t_b1'])
    t_emb = t_emb @ params['t_w2'] + params['t_b2']

    # label embedding (eval mode)
    # TODO(synk): training-time classifier-free-guidance label dropout (torch.rand)
    y_emb = params['y_table'][y]

    c = t_emb + y_emb
    c_silu = _silu(c)

    # all adaLN modulations (depth blocks + final layer) in one weight-streaming matmul
    ada_all = pallas_linear(c_silu, params['w_ada_all'], params['b_ada_all'])

    xx = tok
    for i, blk in enumerate(params['blocks']):
        mod = ada_all[:, i * 6 * D:(i + 1) * 6 * D]                      # (N, 6D)
        q, k, v = qkv_proj(xx, mod, blk['w_qkv'], blk['b_qkv'])
        xx = attn_core(xx, mod, q, k, v, blk['w_proj'], blk['b_proj'], heads)
        xx = mlp_block(xx, mod, blk['w_fc1'], blk['b_fc1'], blk['w_fc2'], blk['b_fc2'])

    mod_f = ada_all[:, depth * 6 * D:]                                   # (N, 2D)
    fin = params['final']
    out = final_layer(xx, mod_f, fin['w_lin'], fin['b_lin'])             # (N, T, p*p*out_c)

    # unpatchify -> (N, out_c, H, W)
    out = out.reshape(N, hh, ww, p, p, out_c)
    out = jnp.einsum('nhwpqc->nchpwq', out)
    return out.reshape(N, out_c, hh * p, ww * p)


# ----------------------------------------------------------------------------------
# pure-JAX reference (same math / same bf16-at-dot policy) for validation
# ----------------------------------------------------------------------------------
def ref_block(x, mod, blk, num_heads):
    N, T, D = x.shape
    hd = D // num_heads
    sm = mod[:, 0:D][:, None]
    scm = mod[:, D:2 * D][:, None]
    gm = mod[:, 2 * D:3 * D][:, None]
    sp = mod[:, 3 * D:4 * D][:, None]
    scp = mod[:, 4 * D:5 * D][:, None]
    gp = mod[:, 5 * D:6 * D][:, None]

    h = _layernorm(x) * (1.0 + scm) + sm
    qkv = _mm(h, blk['w_qkv']) + blk['b_qkv']
    q = qkv[..., 0:D].astype(jnp.bfloat16) * (1.0 / math.sqrt(hd))
    k = qkv[..., D:2 * D].astype(jnp.bfloat16)
    v = qkv[..., 2 * D:3 * D].astype(jnp.bfloat16)
    q = q.reshape(N, T, num_heads, hd).transpose(0, 2, 1, 3)
    k = k.reshape(N, T, num_heads, hd).transpose(0, 2, 1, 3)
    v = v.reshape(N, T, num_heads, hd).transpose(0, 2, 1, 3)
    s = jnp.einsum('nhqd,nhkd->nhqk', q, k, preferred_element_type=jnp.float32)
    p = jax.nn.softmax(s, axis=-1)
    av = jnp.einsum('nhqk,nhkd->nhqd', p.astype(jnp.bfloat16), v,
                    preferred_element_type=jnp.float32)
    av = av.transpose(0, 2, 1, 3).reshape(N, T, D)
    x = x + gm * (_mm(av, blk['w_proj']) + blk['b_proj'])

    h = _layernorm(x) * (1.0 + scp) + sp
    h1 = _mm(h, blk['w_fc1']) + blk['b_fc1']
    h2 = _mm(_gelu_tanh(h1), blk['w_fc2']) + blk['b_fc2']
    return x + gp * h2


def ref_forward(params, x, t, y, cfg):
    N, C, H, W = x.shape
    p = cfg['patch_size']
    D = cfg['hidden_size']
    depth = cfg['depth']
    out_c = cfg['out_channels']
    hh, ww = H // p, W // p
    T = hh * ww

    patches = x.reshape(N, C, hh, p, ww, p).transpose(0, 2, 4, 1, 3, 5).reshape(N, T, C * p * p)
    tok = _mm(patches, params['patch_w']) + params['patch_b'][None]
    tok = tok + params['pos_embed']

    t_freq = timestep_embedding(t, cfg['freq_size'])
    t_emb = _silu(t_freq @ params['t_w1'] + params['t_b1'])
    t_emb = t_emb @ params['t_w2'] + params['t_b2']
    y_emb = params['y_table'][y]
    c = t_emb + y_emb
    c_silu = _silu(c)

    ada_all = _mm(c_silu, params['w_ada_all']) + params['b_ada_all']

    xx = tok
    for i, blk in enumerate(params['blocks']):
        mod = ada_all[:, i * 6 * D:(i + 1) * 6 * D]
        xx = ref_block(xx, mod, blk, cfg['num_heads'])

    mod_f = ada_all[:, depth * 6 * D:]
    shift, scale = mod_f[:, 0:D], mod_f[:, D:2 * D]
    hmod = _layernorm(xx) * (1.0 + scale[:, None]) + shift[:, None]
    out = _mm(hmod, params['final']['w_lin']) + params['final']['b_lin']

    out = out.reshape(N, hh, ww, p, p, out_c)
    out = jnp.einsum('nhwpqc->nchpwq', out)
    return out.reshape(N, out_c, hh * p, ww * p)


# ----------------------------------------------------------------------------------
if __name__ == "__main__":
    cfg = dict(
        input_size=16,
        patch_size=2,
        in_channels=4,
        hidden_size=32,
        depth=2,
        num_heads=4,
        mlp_ratio=4.0,
        num_classes=10,
        freq_size=256,
        learn_sigma=True,
    )
    cfg['out_channels'] = cfg['in_channels'] * 2 if cfg['learn_sigma'] else cfg['in_channels']

    key = jax.random.PRNGKey(0)
    kp, kx, kt = jax.random.split(key, 3)
    params = init_params(kp, cfg)

    x = jax.random.normal(kx, (2, cfg['in_channels'], cfg['input_size'], cfg['input_size']),
                          dtype=jnp.float32)
    t = jax.random.uniform(kt, (2,), dtype=jnp.float32) * 1000.0
    y = jnp.array([3, 7], dtype=jnp.int32)

    out = jax.block_until_ready(dit_forward(params, x, t, y, cfg))
    ref = jax.block_until_ready(ref_forward(params, x, t, y, cfg))

    assert out.shape == (2, cfg['out_channels'], cfg['input_size'], cfg['input_size']), out.shape
    max_diff = float(jnp.max(jnp.abs(out - ref)))
    if not np.allclose(np.asarray(out), np.asarray(ref), rtol=5e-2, atol=5e-3):
        raise AssertionError(f"Pallas DiT output mismatch vs reference, max|diff|={max_diff}")

    print("KERNEL_OK")
</pallas_src>

<mosaic_0001>
module attributes {stable_mosaic.version = 11 : i64} {
  func.func @_linear_kernel(%arg0: i32, %arg1: i32, %arg2: i32, %arg3: memref<128x16xf32, #tpu.memory_space<vmem>>, %arg4: memref<16x128xbf16, #tpu.memory_space<vmem>>, %arg5: memref<1x128xf32, #tpu.memory_space<vmem>>, %arg6: memref<128x128xf32, #tpu.memory_space<vmem>>, %arg7: memref<128x128xf32, #tpu.memory_space<vmem>>) attributes {dimension_semantics = [#tpu.dimension_semantics<parallel>, #tpu.dimension_semantics<parallel>, #tpu.dimension_semantics<arbitrary>], iteration_bounds = array<i64: 1, 1, 1>, scalar_prefetch = 0 : i64, scratch_operands = 1 : i64, tpu.core_type = #tpu.core_type<tc>, window_params = [{transform_indices = @transform_0, window_bounds = array<i64: 128, 16>}, {transform_indices = @transform_1, window_bounds = array<i64: 16, 128>}, {transform_indices = @transform_2, window_bounds = array<i64: 1, 128>}, {transform_indices = @transform_3, window_bounds = array<i64: 128, 128>}]} {
    %c0_i32 = arith.constant 0 : i32
    %0 = arith.cmpi eq, %arg2, %c0_i32 : i32
    %1 = arith.extui %0 : i1 to i32
    %c0_i32_0 = arith.constant 0 : i32
    %2 = arith.cmpi ne, %1, %c0_i32_0 : i32
    scf.if %2 {
      %cst_10 = arith.constant 0.000000e+00 : f32
      %13 = vector.broadcast %cst_10 : f32 to vector<128x128xf32>
      %c0_11 = arith.constant 0 : index
      %c0_12 = arith.constant 0 : index
      %14 = vector.load %arg7[%c0_11, %c0_12] : memref<128x128xf32, #tpu.memory_space<vmem>>, vector<128x128xf32>
      tpu.vector_store %arg7[%c0_11, %c0_12], %13 {strides = array<i32>} : memref<128x128xf32, #tpu.memory_space<vmem>>, vector<128x128xf32>,
    } else {
    }
    %c0 = arith.constant 0 : index
    %c0_1 = arith.constant 0 : index
    %3 = vector.load %arg7[%c0, %c0_1] : memref<128x128xf32, #tpu.memory_space<vmem>>, vector<128x128xf32>
    %c0_2 = arith.constant 0 : index
    %c0_3 = arith.constant 0 : index
    %4 = vector.load %arg3[%c0_2, %c0_3] : memref<128x16xf32, #tpu.memory_space<vmem>>, vector<128x16xf32>
    %5 = arith.truncf %4 : vector<128x16xf32> to vector<128x16xbf16>
    %c0_4 = arith.constant 0 : index
    %c0_5 = arith.constant 0 : index
    %6 = vector.load %arg4[%c0_4, %c0_5] : memref<16x128xbf16, #tpu.memory_space<vmem>>, vector<16x128xbf16>
    %cst = arith.constant dense<0.000000e+00> : vector<128x128xf32>
    %7 = tpu.matmul %5, %6, %cst {dimension_numbers = #tpu.dot_dimension_numbers<[1], [0], [0], [1], [0, 0, 1, 1], [], []>} : vector<128x16xbf16>, vector<16x128xbf16>, vector<128x128xf32> -> vector<128x128xf32>
    %8 = arith.addf %3, %7 : vector<128x128xf32>
    %c0_6 = arith.constant 0 : index
    %c0_7 = arith.constant 0 : index
    %9 = vector.load %arg7[%c0_6, %c0_7] : memref<128x128xf32, #tpu.memory_space<vmem>>, vector<128x128xf32>
    tpu.vector_store %arg7[%c0_6, %c0_7], %8 {strides = array<i32>} : memref<128x128xf32, #tpu.memory_space<vmem>>, vector<128x128xf32>,
    %c0_i32_8 = arith.constant 0 : i32
    %10 = arith.cmpi eq, %arg2, %c0_i32_8 : i32
    %11 = arith.extui %10 : i1 to i32
    %c0_i32_9 = arith.constant 0 : i32
    %12 = arith.cmpi ne, %11, %c0_i32_9 : i32
    scf.if %12 {
      %c0_10 = arith.constant 0 : index
      %c0_11 = arith.constant 0 : index
      %13 = vector.load %arg7[%c0_10, %c0_11] : memref<128x128xf32, #tpu.memory_space<vmem>>, vector<128x128xf32>
      %c0_12 = arith.constant 0 : index
      %c0_13 = arith.constant 0 : index
      %14 = vector.load %arg5[%c0_12, %c0_13] : memref<1x128xf32, #tpu.memory_space<vmem>>, vector<1x128xf32>
      %15 = vector.broadcast %14 : vector<1x128xf32> to vector<128x128xf32>
      %16 = arith.addf %13, %15 : vector<128x128xf32>
      %c0_14 = arith.constant 0 : index
      %c0_15 = arith.constant 0 : index
      %17 = vector.load %arg6[%c0_14, %c0_15] : memref<128x128xf32, #tpu.memory_space<vmem>>, vector<128x128xf32>
      tpu.vector_store %arg6[%c0_14, %c0_15], %16 {strides = array<i32>} : memref<128x128xf32, #tpu.memory_space<vmem>>, vector<128x128xf32>,
    } else {
    }
    return
  }
  func.func @transform_0(%arg0: i32, %arg1: i32, %arg2: i32) -> (i32, i32) {
    %c0_i32 = arith.constant 0 : i32
    return %arg0, %arg2 : i32, i32
  }
  func.func @transform_1(%arg0: i32, %arg1: i32, %arg2: i32) -> (i32, i32) {
    %c0_i32 = arith.constant 0 : i32
    return %arg2, %arg1 : i32, i32
  }
  func.func @transform_2(%arg0: i32, %arg1: i32, %arg2: i32) -> (i32, i32) {
    %c0_i32 = arith.constant 0 : i32
    %c0_i32_0 = arith.constant 0 : i32
    return %c0_i32, %arg1 : i32, i32
  }
  func.func @transform_3(%arg0: i32, %arg1: i32, %arg2: i32) -> (i32, i32) {
    %c0_i32 = arith.constant 0 : i32
    return %arg0, %arg1 : i32, i32
  }
}

</mosaic_0001>

<bundles_post_ra>
// kernel: tpu_custom_call.1
= control target key start
LH: loop header
LB: loop body
LE: loop exit
PB: predicated region body
PF: predicated region fallthrough
CT: control target
= control target key end

     0   :  { %vm84_vm0 = vcmask 130048   ;;  %s476_s0 = inlined_call_operand.vmem [shape: f32[128,16], index: 0, kind: input, shape index: {}]   ;;  %s477_s1 = inlined_call_operand.vmem [shape: bf16[16,128], index: 1, kind: input, shape index: {}]   ;;  %s478_s2 = inlined_call_operand.vmem [shape: f32[1,128], index: 2, kind: input, shape index: {}]   ;;  %s479_s3 = inlined_call_operand.hbm [shape: f32[128,128], index: 3, kind: output, shape index: {}]  }
   0x1   :  { %v354_v0 = vld [vmem:[%s477_s1] sm:$0xff]   ;;  %v53_v2 = vld [vmem:[%s476_s0 + $0x8] sm:$0xff]  ;;  %v54_v6 = vld [vmem:[%s476_s0 + $0x10] sm:$0xff] }
   0x2   :  { %v52_v1 = vld [vmem:[%s476_s0] sm:$0xff]  ;;  %331 = vmatprep.subr.bf16.mxu0 %v354_v0  ;;  %349 = vmatprep.subr.bf16.mxu1 %v354_v0  ;;  %v61_v5 = vld [vmem:[%s476_s0 + $0x48] sm:$0xff]  ;;  %v55_v7 = vld [vmem:[%s476_s0 + $0x18] sm:$0xff] }
   0x3   :  { %v60_v3 = vld [vmem:[%s476_s0 + $0x40] sm:$0xff]  ;;  %v68_v4 = vpack.c.bf16 %v53_v2, %v52_v1  ;;  %332 = vmatpush3.bf16.msra.mxu0 %v354_v0  ;;  %350 = vmatpush3.bf16.msra.mxu1 %v354_v0  ;;  %v69_v9 = vpack.c.bf16 %v55_v7, %v54_v6  ;;  %v62_v10 = vld [vmem:[%s476_s0 + $0x50] sm:$0xff]  ;;  %v63_v11 = vld [vmem:[%s476_s0 + $0x58] sm:$0xff] }
   0x4   :  { %v72_v8 = vpack.c.bf16 %v61_v5, %v60_v3  ;;  %v56_v12 = vld [vmem:[%s476_s0 + $0x20] sm:$0xff]  ;;  %v73_v13 = vpack.c.bf16 %v63_v11, %v62_v10  ;;  %v57_v14 = vld [vmem:[%s476_s0 + $0x28] sm:$0xff]  ;;  %v58_v19 = vld [vmem:[%s476_s0 + $0x30] sm:$0xff] }
   0x5   :  { %333 = vmatprep.mubr.msk.bf16.mxu0 %vm84_vm0, %v68_v4  ;;  %v64_v15 = vld [vmem:[%s476_s0 + $0x60] sm:$0xff]  ;;  %v65_v16 = vld [vmem:[%s476_s0 + $0x68] sm:$0xff]  ;;  %v70_v17 = vpack.c.bf16 %v57_v14, %v56_v12 }
   0x6   :  { %341 = vmatprep.mubr.msk.bf16.mxu1 %vm84_vm0, %v72_v8  ;;  %v74_v18 = vpack.c.bf16 %v65_v16, %v64_v15  ;;  %334 = vmatmul.mubr.msk.bf16.vlgmr.msra.gmra.mrb[0].mxu0 %vm84_vm0, %v69_v9 }
   0x7   :  { %342 = vmatmul.mubr.msk.bf16.vlgmr.msra.gmra.mrb[0].mxu1 %vm84_vm0, %v73_v13 }
   0x8   :  { %8 = vsyncpa [#allocation4], 0  ;;  %337 = vmatprep.mubr.msk.bf16.mxu0 %vm84_vm0, %v70_v17  ;;  %345 = vmatprep.mubr.msk.bf16.mxu1 %vm84_vm0, %v74_v18  ;;  %v59_v20 = vld [vmem:[%s476_s0 + $0x38] sm:$0xff]  ;;  %v66_v21 = vld [vmem:[%s476_s0 + $0x70] sm:$0xff] }
   0x9   :  { %v67_v22 = vld [vmem:[%s476_s0 + $0x78] sm:$0xff]  ;;  %v71_v23 = vpack.c.bf16 %v59_v20, %v58_v19  ;;  %v321_v25 = vld [vmem:[%s478_s2] ss:$0 sm:$0xff]  ;;  %s379_s0 = smov [#allocation3]  }
   0xa   :  { %v75_v24 = vpack.c.bf16 %v67_v22, %v66_v21  ;;  %s301_s2 = sshll.u32 %s379_s0, 4  ;;  %s302_s2 = int_to_ptr.vmem [resolvable:$true] %s301_s2 }
   0xb   :  { %s355_s20 = scalar_lea.vmem %s302_s2, 2048  ;;  %p360_p1 = scmp.lt.s32.totalorder %s302_s2, %s302_s2 }
   0xc   :  { %p356_p0 = scmp.ne.s32.totalorder %s302_s2, %s355_s20  ;;  %p361_p2 = scmp.lt.s32.totalorder %s355_s20, %s355_s20 }
   0xe   :  { %338 = vmatmul.mubr.msk.bf16.gmra.mrb[4].mxu0 %vm84_vm0, %v71_v23  ;;  %p362_p3 = por %p361_p2, %p360_p1 }
   0xf   :  { %346 = vmatmul.mubr.msk.bf16.gmra.mrb[4].mxu1 %vm84_vm0, %v75_v24 }
  0x10   :  { %p363_p4 = pnand %p362_p3, %p356_p0 }
  0xd9   :  { %v335_v26 = vpop.f32.mrb[0].mxu0 }
  0xda   :  { %v343_v27 = vpop.f32.mrb[0].mxu1  ;;  %v266_v28 = vadd.f32 %v335_v26, %v321_v25  ;;  %v143_v30 = vpop.f32.mrb[1].mxu0 }
  0xdb   :  { %v274_v29 = vadd.f32 %v343_v27, %v321_v25  ;;  %v175_v31 = vpop.f32.mrb[1].mxu1  ;;  %v264_v32 = vadd.f32 %v321_v25, %v143_v30  ;;  %v336_v34 = vpop.f32.mrb[2].mxu0 }
  0xdc   :  { %v272_v33 = vadd.f32 %v321_v25, %v175_v31  ;;  %v344_v35 = vpop.f32.mrb[2].mxu1  ;;  %282 = vst [vmem:[#allocation3 + $0x10] sm:$0xff] %v266_v28  ;;  %v267_v36 = vadd.f32 %v336_v34, %v321_v25  ;;  %v146_v38 = vpop.f32.mrb[3].mxu0 }
  0xdd   :  { %290 = vst [vmem:[#allocation3 + $0x50] sm:$0xff] %v274_v29  ;;  %v275_v37 = vadd.f32 %v344_v35, %v321_v25  ;;  %v178_v39 = vpop.f32.mrb[3].mxu1  ;;  %280 = vst [vmem:[#allocation3] sm:$0xff] %v264_v32  ;;  %v265_v40 = vadd.f32 %v321_v25, %v146_v38 }
  0xde   :  { %288 = vst [vmem:[#allocation3 + $0x40] sm:$0xff] %v272_v33  ;;  %v273_v41 = vadd.f32 %v321_v25, %v178_v39  ;;  %283 = vst [vmem:[#allocation3 + $0x18] sm:$0xff] %v267_v36 }
  0xdf   :  { %291 = vst [vmem:[#allocation3 + $0x58] sm:$0xff] %v275_v37  ;;  %281 = vst [vmem:[#allocation3 + $0x8] sm:$0xff] %v265_v40 }
  0xe0   :  { %289 = vst [vmem:[#allocation3 + $0x48] sm:$0xff] %v273_v41 }
  0xe1   :  { %v339_v42 = vpop.f32.mrb[4].mxu0 }
  0xe2   :  { %v347_v43 = vpop.f32.mrb[4].mxu1  ;;  %v270_v44 = vadd.f32 %v339_v42, %v321_v25  ;;  %v159_v46 = vpop.f32.mrb[5].mxu0 }
  0xe3   :  { %v278_v45 = vadd.f32 %v347_v43, %v321_v25  ;;  %v191_v47 = vpop.f32.mrb[5].mxu1  ;;  %v268_v48 = vadd.f32 %v321_v25, %v159_v46  ;;  %v340_v50 = vpop.f32.mrb[6].mxu0 }
  0xe4   :  { %v276_v49 = vadd.f32 %v321_v25, %v191_v47  ;;  %v348_v51 = vpop.f32.mrb[6].mxu1  ;;  %286 = vst [vmem:[#allocation3 + $0x30] sm:$0xff] %v270_v44  ;;  %v271_v52 = vadd.f32 %v340_v50, %v321_v25  ;;  %v162_v54 = vpop.f32.mrb[7].mxu0 }
  0xe5   :  { %294 = vst [vmem:[#allocation3 + $0x70] sm:$0xff] %v278_v45  ;;  %v279_v53 = vadd.f32 %v348_v51, %v321_v25  ;;  %v194_v55 = vpop.f32.mrb[7].mxu1  ;;  %284 = vst [vmem:[#allocation3 + $0x20] sm:$0xff] %v268_v48  ;;  %v269_v56 = vadd.f32 %v321_v25, %v162_v54 }
  0xe6   :  { %292 = vst [vmem:[#allocation3 + $0x60] sm:$0xff] %v276_v49  ;;  %v277_v57 = vadd.f32 %v321_v25, %v194_v55  ;;  %287 = vst [vmem:[#allocation3 + $0x38] sm:$0xff] %v271_v52 }
  0xe7   :  { %295 = vst [vmem:[#allocation3 + $0x78] sm:$0xff] %v279_v53  ;;  %285 = vst [vmem:[#allocation3 + $0x28] sm:$0xff] %v269_v56 }
  0xe8   :  { %293 = vst [vmem:[#allocation3 + $0x68] sm:$0xff] %v277_v57 }
  0xe9   :  { %366 = shalt.err (!%p363_p4)
}
  0xea   :  { %s367_s22 = scalar_lea.hbm %s479_s3, 2048 }
  0xeb   :  { %p368_p5 = scmp.ne.s32.totalorder %s479_s3, %s367_s22  ;;  %p371_p6 = scmp.lt.u32.totalorder %s367_s22, %s479_s3 }
  0xed   :  { %p373_p7 = pnand %p371_p6, %p368_p5 }
  0xef   :  { %376 = shalt.err (!%p373_p7)
}
  0xf0   :  { %s380_s27 = smov 128   ;;  %s381_s28 = smov 8  }
  0xf1   :  { %307 = dma.vmem_to_hbm [thread:$0]  %s302_s2, 2048, %s479_s3, [#allocation4], %s380_s27, %s380_s27, %s381_s28  }
  0xf2   :  { %377 = dma.done.wait [#allocation4], 2048  }
  0xf3   :  { %378 = vsyncadd [#allocation4], 4294965248 }
  0xf4   :  { %311 = vsyncpa [#allocation4], 1 }

</bundles_post_ra>
